<compile_context>
chip_gen: v7x
topology: tpu7x:2x2x1
jax: 0.10.0
libtpu: 0.0.40
codegen_flags: <defaults>
</compile_context>

<pallas_src>
import math
from itertools import combinations_with_replacement

import numpy as np
import jax
import jax.numpy as jnp
from jax.experimental import pallas as pl
from jax.experimental.pallas import tpu as pltpu

_TINY_F32 = float(np.finfo(np.float32).tiny)   # smallest normal f32; 0.5*d2*log(tiny) == 0 at d2==0


# ----------------------------- setup (plain JAX) -----------------------------
# TODO(synk): the __init__-time dense linear solve (torch.linalg.solve) and the `neighbors`
# option have no clean Pallas equivalent; the fit stays in plain JAX below.

def monomial_powers(ndim, degree):
    """Same semantics as torchrbf.monomial_powers; returns numpy int array."""
    nmonos = math.comb(degree + ndim, ndim)
    out = np.zeros((nmonos, ndim), dtype=np.int32)
    count = 0
    for deg in range(degree + 1):
        for mono in combinations_with_replacement(range(ndim), deg):
            for var in mono:
                out[count, var] += 1
            count += 1
    return out


def _tps(r):
    # thin_plate_spline: xlogy(r**2, r); 0 at r == 0
    return jnp.where(r > 0, r * r * jnp.log(jnp.where(r > 0, r, 1.0)), 0.0)


def _cdist(a, b):
    a2 = jnp.sum(a * a, axis=1, keepdims=True)
    b2 = jnp.sum(b * b, axis=1, keepdims=True)
    d2 = a2 + b2.T - 2.0 * (a @ b.T)
    return jnp.sqrt(jnp.maximum(d2, 0.0))


def _polynomial_matrix(x, powers):
    cols = []
    for j in range(powers.shape[0]):
        col = jnp.ones((x.shape[0],), x.dtype)
        for k in range(powers.shape[1]):
            p = int(powers[j, k])
            if p > 0:
                col = col * x[:, k] ** p
        cols.append(col)
    return jnp.stack(cols, axis=1)


def fit_rbf(y, d, smoothing, epsilon, powers):
    """Equivalent of torchrbf.build + solve (thin_plate_spline kernel)."""
    r = powers.shape[0]
    mins = jnp.min(y, axis=0)
    maxs = jnp.max(y, axis=0)
    shift = (maxs + mins) / 2.0
    scale = (maxs - mins) / 2.0
    scale = jnp.where(scale == 0.0, 1.0, scale)
    yeps = y * epsilon
    K = _tps(_cdist(yeps, yeps)) + jnp.diag(smoothing)
    if r > 0:
        yhat = (y - shift) / scale
        P = _polynomial_matrix(yhat, powers)
        lhs = jnp.block([[K, P], [P.T, jnp.zeros((r, r), jnp.float32)]])
        rhs = jnp.concatenate([d, jnp.zeros((r, d.shape[1]), jnp.float32)], axis=0)
    else:
        lhs, rhs = K, d
    coeffs = jnp.linalg.solve(lhs, rhs)
    return shift, scale, coeffs


# ----------------------------- Pallas forward kernel -------------------------

def make_forward_kernel(powers_np, ndim, mode):
    """Kernel body factory; `mode` in {"deg1", "general", "none"}; powers are static."""
    powers_static = [[int(p) for p in row] for row in np.asarray(powers_np)]

    def _accumulate(j, xepsT_ref, x2_ref, yneg2_ref, y2_ref, ckvTh_ref, o_ref):
        # Zero the resident (m, block_q) output block at the start of each n-sweep.
        @pl.when(j == 0)
        def _():
            o_ref[...] = jnp.zeros_like(o_ref)

        # Squared distances via the Gram trick; the -2*y.x cross term runs on the MXU
        # (the -2 is folded into yneg2 in the wrapper, the K axis is zero-padded to 8).
        cross = jnp.dot(yneg2_ref[...], xepsT_ref[...],
                        preferred_element_type=jnp.float32)            # (nc, bq)
        d2 = jnp.maximum(y2_ref[...] + x2_ref[...] + cross, _TINY_F32)  # clamp: >=0 and log-safe
        # thin-plate spline: r^2*log r = 0.5*d2*log d2; the 0.5 is folded into ckvTh.
        phi2 = d2 * jnp.log(d2)                                         # (nc, bq)
        o_ref[...] += jnp.dot(ckvTh_ref[...], phi2,
                              preferred_element_type=jnp.float32)       # (m, bq)

    if mode == "none":
        def kernel(xepsT_ref, x2_ref, yneg2_ref, y2_ref, ckvTh_ref, o_ref):
            _accumulate(pl.program_id(1), xepsT_ref, x2_ref, yneg2_ref, y2_ref,
                        ckvTh_ref, o_ref)
        return kernel

    if mode == "deg1":
        def kernel(xepsT_ref, x2_ref, yneg2_ref, y2_ref, ckvTh_ref, W_ref, b_ref, o_ref):
            j = pl.program_id(1)
            _accumulate(j, xepsT_ref, x2_ref, yneg2_ref, y2_ref, ckvTh_ref, o_ref)

            @pl.when(j == pl.num_programs(1) - 1)
            def _():
                # degree<=1 tail with shift/scale/epsilon folded into W/b:  b + W @ (eps*x)
                out = o_ref[...] + b_ref[...]
                for k in range(ndim):
                    out = out + W_ref[:, k:k + 1] * xepsT_ref[k:k + 1, :]
                o_ref[...] = out
        return kernel

    def kernel(xepsT_ref, x2_ref, xhatT_ref, yneg2_ref, y2_ref, ckvTh_ref,
               cpolyT_ref, o_ref):
        j = pl.program_id(1)
        _accumulate(j, xepsT_ref, x2_ref, yneg2_ref, y2_ref, ckvTh_ref, o_ref)

        @pl.when(j == pl.num_programs(1) - 1)
        def _():
            # General polynomial tail: broadcast-FMA per monomial (no K=r matmul).
            out = o_ref[...]
            for idx, row in enumerate(powers_static):
                c = cpolyT_ref[:, idx:idx + 1]                          # (m, 1)
                v = None
                for k, p in enumerate(row):
                    if p > 0:
                        term = xhatT_ref[k:k + 1, :] ** p               # (1, bq)
                        v = term if v is None else v * term
                out = out + (c if v is None else c * v)
            o_ref[...] = out
    return kernel


# ----------------------------- tiling / VMEM math -----------------------------

def _pad_bytes(rows, cols, itemsize=4):
    return (-(-rows // 8) * 8) * (-(-cols // 128) * 128) * itemsize


def _vmem_estimate(m, nc, ndim_pad, block_q, mode, r):
    inp = (_pad_bytes(ndim_pad, block_q) + _pad_bytes(1, block_q)
           + _pad_bytes(nc, ndim_pad) + _pad_bytes(nc, 1) + _pad_bytes(m, nc))
    if mode == "general":
        inp += _pad_bytes(ndim_pad, block_q) + _pad_bytes(m, max(r, 1))
    elif mode == "deg1":
        inp += _pad_bytes(m, ndim_pad) + _pad_bytes(m, 1)
    out = _pad_bytes(m, block_q)
    interm = 3 * _pad_bytes(nc, block_q)      # cross / d2 / phi live values
    return 2 * (inp + out) + interm           # 2x for double-buffered pipeline stages


# ----------------------------- wrapper (prepare / forward) --------------------

def prepare_rbf(y, shift, scale, coeffs, powers_np, epsilon, n_chunk=512):
    """__init__-time packing: transposed / padded / folded buffers for the kernel."""
    n, ndim = y.shape
    powers_arr = np.asarray(powers_np)
    r = int(powers_arr.shape[0])
    m = int(coeffs.shape[1])
    epsilon = float(epsilon)

    # Contraction dim of the cross matmul, zero-padded to a sublane granule so the
    # (ndim_pad, block_q) RHS carries no implicit (garbage) padding.
    ndim_pad = max(8, -(-ndim // 8) * 8)

    # n-chunk bounds the (nc x block_q) phi working set regardless of n.
    if n <= n_chunk:
        nc = -(-n // 8) * 8                      # single chunk, sublane-aligned
    else:
        nc = max(128, (n_chunk // 128) * 128)    # ckvTh block last dim must be 128-aligned
    n_pad = -(-n // nc) * nc

    yeps = y * epsilon
    y2 = jnp.sum(yeps * yeps, axis=1, keepdims=True)                    # (n, 1)
    yneg2 = jnp.pad(-2.0 * yeps, ((0, n_pad - n), (0, ndim_pad - ndim)))  # (n_pad, ndim_pad)
    y2 = jnp.pad(y2, ((0, n_pad - n), (0, 0)))                           # (n_pad, 1)
    ckvTh = jnp.pad(0.5 * coeffs[:n].T, ((0, 0), (0, n_pad - n)))        # (m, n_pad), 0.5 folded

    prep = dict(ndim=ndim, ndim_pad=ndim_pad, n=n, n_pad=n_pad, n_chunk=nc,
                m=m, r=r, epsilon=epsilon, powers=powers_arr,
                yneg2=yneg2, y2=y2, ckvTh=ckvTh, shift=shift, scale=scale)

    if r == 0:
        prep["mode"] = "none"
        return prep

    cpolyT = coeffs[n:].T                                                # (m, r)
    deg1 = (r == ndim + 1
            and np.all(powers_arr[0] == 0)
            and np.array_equal(powers_arr[1:], np.eye(ndim, dtype=np.int64)))
    if deg1:
        inv_scale = 1.0 / scale
        Wm = cpolyT[:, 1:] * inv_scale[None, :]                          # (m, ndim)
        prep["b"] = cpolyT[:, 0:1] - Wm @ shift.reshape(ndim, 1)         # (m, 1)
        prep["W"] = Wm / epsilon                                         # applied to eps*x
        prep["mode"] = "deg1"
    else:
        prep["cpolyT"] = cpolyT
        prep["mode"] = "general"
    return prep


def rbf_forward(x, prep, block_q=None, vmem_budget_bytes=24 * 1024 * 1024,
                transpose_output=True):
    nx, ndim = x.shape
    assert ndim == prep["ndim"]
    m, nc, n_pad = prep["m"], prep["n_chunk"], prep["n_pad"]
    ndim_pad, mode, r = prep["ndim_pad"], prep["mode"], prep["r"]
    eps = prep["epsilon"]

    # Query tile: lane-dense multiple of 128 (512 is a 256-multiple for the v6e/v7x MXU),
    # big enough to amortize the ~0.35 us per-grid-step overhead, shrunk only if the
    # working set would blow the VMEM budget (v7x: 64 MiB physical / 32 MiB scoped).
    if block_q is None:
        block_q = min(512, -(-nx // 128) * 128)
    block_q = max(128, (block_q // 128) * 128)
    while (_vmem_estimate(m, nc, ndim_pad, block_q, mode, r) > vmem_budget_bytes
           and block_q > 128):
        block_q = max(128, (block_q // 2) // 128 * 128)
    nx_pad = -(-nx // block_q) * block_q

    xepsT = (x * eps).T if eps != 1.0 else x.T                           # (ndim, nx)
    x2 = jnp.sum(xepsT * xepsT, axis=0, keepdims=True)                   # (1, nx)
    xepsT = jnp.pad(xepsT, ((0, ndim_pad - ndim), (0, nx_pad - nx)))
    x2 = jnp.pad(x2, ((0, 0), (0, nx_pad - nx)))

    inputs = [xepsT, x2]
    in_specs = [pl.BlockSpec((ndim_pad, block_q), lambda i, j: (0, i)),
                pl.BlockSpec((1, block_q), lambda i, j: (0, i))]
    if mode == "general":
        xhatT = ((x - prep["shift"]) / prep["scale"]).T                  # (ndim, nx)
        xhatT = jnp.pad(xhatT, ((0, 0), (0, nx_pad - nx)))
        inputs.append(xhatT)
        in_specs.append(pl.BlockSpec((ndim, block_q), lambda i, j: (0, i)))
    inputs += [prep["yneg2"], prep["y2"], prep["ckvTh"]]
    in_specs += [pl.BlockSpec((nc, ndim_pad), lambda i, j: (j, 0)),
                 pl.BlockSpec((nc, 1), lambda i, j: (j, 0)),
                 pl.BlockSpec((m, nc), lambda i, j: (0, j))]
    if mode == "deg1":
        inputs += [prep["W"], prep["b"]]
        in_specs += [pl.BlockSpec((m, ndim), lambda i, j: (0, 0)),
                     pl.BlockSpec((m, 1), lambda i, j: (0, 0))]
    elif mode == "general":
        inputs.append(prep["cpolyT"])
        in_specs.append(pl.BlockSpec((m, r), lambda i, j: (0, 0)))

    est = _vmem_estimate(m, nc, ndim_pad, block_q, mode, r)
    vmem_limit = int(min(max(2 * est, 16 * 1024 * 1024), 32 * 1024 * 1024))

    kernel = make_forward_kernel(prep["powers"], ndim, mode)
    outT = pl.pallas_call(
        kernel,
        out_shape=jax.ShapeDtypeStruct((m, nx_pad), jnp.float32),
        grid_spec=pltpu.PrefetchScalarGridSpec(
            num_scalar_prefetch=0,
            grid=(nx_pad // block_q, n_pad // nc),        # n-reduction axis last
            in_specs=in_specs,
            out_specs=pl.BlockSpec((m, block_q), lambda i, j: (0, i)),
        ),
        compiler_params=pltpu.CompilerParams(
            dimension_semantics=("parallel", "arbitrary"),
            vmem_limit_bytes=vmem_limit),
    )(*inputs)

    outT = outT[:, :nx]
    # NOTE: the transpose back to (nx, m) is a separate XLA op; pass
    # transpose_output=False if the consumer can take the lane-dense (m, nx) layout.
    return outT.T if transpose_output else outT


# ----------------------------- float64 numpy reference -----------------------

def rbf_forward_ref_np(x, y, shift, scale, coeffs, powers_np, epsilon):
    """Forward of the torch module, in float64 numpy, for a tight accuracy check."""
    x = np.asarray(x, np.float64)
    y = np.asarray(y, np.float64)
    shift = np.asarray(shift, np.float64)
    scale = np.asarray(scale, np.float64)
    coeffs = np.asarray(coeffs, np.float64)
    xe = x * epsilon
    ye = y * epsilon
    dist = np.sqrt(np.maximum(((xe[:, None, :] - ye[None, :, :]) ** 2).sum(-1), 0.0))
    kv = np.where(dist > 0, dist * dist * np.log(np.where(dist > 0, dist, 1.0)), 0.0)
    xhat = (x - shift) / scale
    pmat = np.ones((x.shape[0], powers_np.shape[0]), np.float64)
    for j in range(powers_np.shape[0]):
        for k in range(powers_np.shape[1]):
            p = int(powers_np[j, k])
            if p > 0:
                pmat[:, j] *= xhat[:, k] ** p
    vec = np.concatenate([kv, pmat], axis=1)
    return vec @ coeffs


# ----------------------------------- main -------------------------------------

if __name__ == "__main__":
    # module-implied shapes: y (n, ndim) data coords, d (n, m) values,
    # x (nx, ndim) query points -> out (nx, m)
    n, ndim, m, nx = 64, 3, 4, 512
    epsilon = 1.0                                 # thin_plate_spline is scale-invariant
    degree = 1                                    # min_degree for thin_plate_spline
    powers_np = monomial_powers(ndim, degree)     # (4, 3)

    key = jax.random.PRNGKey(0)
    k1, k2, k3 = jax.random.split(key, 3)
    y = jax.random.uniform(k1, (n, ndim), jnp.float32)
    d = jax.random.normal(k2, (n, m), jnp.float32)
    x = jax.random.uniform(k3, (nx, ndim), jnp.float32)
    smoothing = jnp.zeros((n,), jnp.float32)      # default smoothing = 0.0

    # __init__-equivalent: solve the RBF linear system and pack kernel inputs.
    shift, scale, coeffs = fit_rbf(y, d, smoothing, epsilon, powers_np)
    prep = prepare_rbf(y, shift, scale, coeffs, powers_np, epsilon)

    # forward (Pallas kernel); default block_q=512 -> a single grid step at nx=512.
    out = rbf_forward(x, prep)
    out = jax.block_until_ready(out)

    # check against float64 reference of the torch forward (same coeffs)
    ref = rbf_forward_ref_np(x, y, shift, scale, coeffs, powers_np, epsilon)
    assert out.shape == (nx, m)
    err = float(np.max(np.abs(np.asarray(out, np.float64) - ref)))
    assert np.allclose(np.asarray(out, np.float64), ref, rtol=2e-3, atol=2e-3), err

    print("KERNEL_OK")
</pallas_src>

<mosaic_0001>
module attributes {stable_mosaic.version = 11 : i64} {
  func.func @kernel(%arg0: i32, %arg1: i32, %arg2: memref<8x512xf32, #tpu.memory_space<vmem>>, %arg3: memref<1x512xf32, #tpu.memory_space<vmem>>, %arg4: memref<64x8xf32, #tpu.memory_space<vmem>>, %arg5: memref<64x1xf32, #tpu.memory_space<vmem>>, %arg6: memref<4x64xf32, #tpu.memory_space<vmem>>, %arg7: memref<4x3xf32, #tpu.memory_space<vmem>>, %arg8: memref<4x1xf32, #tpu.memory_space<vmem>>, %arg9: memref<4x512xf32, #tpu.memory_space<vmem>>) attributes {dimension_semantics = [#tpu.dimension_semantics<parallel>, #tpu.dimension_semantics<arbitrary>], iteration_bounds = array<i64: 1, 1>, scalar_prefetch = 0 : i64, scratch_operands = 0 : i64, tpu.core_type = #tpu.core_type<tc>, window_params = [{transform_indices = @transform_0, window_bounds = array<i64: 8, 512>}, {transform_indices = @transform_1, window_bounds = array<i64: 1, 512>}, {transform_indices = @transform_2, window_bounds = array<i64: 64, 8>}, {transform_indices = @transform_3, window_bounds = array<i64: 64, 1>}, {transform_indices = @transform_4, window_bounds = array<i64: 4, 64>}, {pipeline_mode = #tpu.pipeline_mode<synchronous>, transform_indices = @transform_5, window_bounds = array<i64: 4, 3>}, {pipeline_mode = #tpu.pipeline_mode<synchronous>, transform_indices = @transform_6, window_bounds = array<i64: 4, 1>}, {transform_indices = @transform_7, window_bounds = array<i64: 4, 512>}]} {
    %c0_i32 = arith.constant 0 : i32
    %0 = arith.cmpi eq, %arg1, %c0_i32 : i32
    %1 = arith.extui %0 : i1 to i32
    %c0_i32_0 = arith.constant 0 : i32
    %2 = arith.cmpi ne, %1, %c0_i32_0 : i32
    scf.if %2 {
      %cst_18 = arith.constant 0.000000e+00 : f32
      %24 = vector.broadcast %cst_18 : f32 to vector<4x512xf32>
      %c0_19 = arith.constant 0 : index
      %c0_20 = arith.constant 0 : index
      %25 = vector.load %arg9[%c0_19, %c0_20] : memref<4x512xf32, #tpu.memory_space<vmem>>, vector<4x512xf32>
      tpu.vector_store %arg9[%c0_19, %c0_20], %24 {strides = array<i32>} : memref<4x512xf32, #tpu.memory_space<vmem>>, vector<4x512xf32>,
    } else {
    }
    %c0 = arith.constant 0 : index
    %c0_1 = arith.constant 0 : index
    %3 = vector.load %arg4[%c0, %c0_1] : memref<64x8xf32, #tpu.memory_space<vmem>>, vector<64x8xf32>
    %c0_2 = arith.constant 0 : index
    %c0_3 = arith.constant 0 : index
    %4 = vector.load %arg2[%c0_2, %c0_3] : memref<8x512xf32, #tpu.memory_space<vmem>>, vector<8x512xf32>
    %cst = arith.constant dense<0.000000e+00> : vector<64x512xf32>
    %5 = tpu.matmul %3, %4, %cst {dimension_numbers = #tpu.dot_dimension_numbers<[1], [0], [0], [1], [0, 0, 1, 1], [], []>} : vector<64x8xf32>, vector<8x512xf32>, vector<64x512xf32> -> vector<64x512xf32>
    %c0_4 = arith.constant 0 : index
    %c0_5 = arith.constant 0 : index
    %6 = vector.load %arg5[%c0_4, %c0_5] : memref<64x1xf32, #tpu.memory_space<vmem>>, vector<64x1xf32>
    %c0_6 = arith.constant 0 : index
    %c0_7 = arith.constant 0 : index
    %7 = vector.load %arg3[%c0_6, %c0_7] : memref<1x512xf32, #tpu.memory_space<vmem>>, vector<1x512xf32>
    %8 = vector.broadcast %6 : vector<64x1xf32> to vector<64x512xf32>
    %9 = vector.broadcast %7 : vector<1x512xf32> to vector<64x512xf32>
    %10 = arith.addf %8, %9 : vector<64x512xf32>
    %11 = arith.addf %10, %5 : vector<64x512xf32>
    %cst_8 = arith.constant 1.17549435E-38 : f32
    %12 = vector.broadcast %cst_8 : f32 to vector<64x512xf32>
    %13 = arith.maximumf %11, %12 : vector<64x512xf32>
    %14 = math.log %13 : vector<64x512xf32>
    %15 = arith.mulf %13, %14 : vector<64x512xf32>
    %c0_9 = arith.constant 0 : index
    %c0_10 = arith.constant 0 : index
    %16 = vector.load %arg9[%c0_9, %c0_10] : memref<4x512xf32, #tpu.memory_space<vmem>>, vector<4x512xf32>
    %c0_11 = arith.constant 0 : index
    %c0_12 = arith.constant 0 : index
    %17 = vector.load %arg6[%c0_11, %c0_12] : memref<4x64xf32, #tpu.memory_space<vmem>>, vector<4x64xf32>
    %cst_13 = arith.constant dense<0.000000e+00> : vector<4x512xf32>
    %18 = tpu.matmul %17, %15, %cst_13 {dimension_numbers = #tpu.dot_dimension_numbers<[1], [0], [0], [1], [0, 0, 1, 1], [], []>} : vector<4x64xf32>, vector<64x512xf32>, vector<4x512xf32> -> vector<4x512xf32>
    %19 = arith.addf %16, %18 : vector<4x512xf32>
    %c0_14 = arith.constant 0 : index
    %c0_15 = arith.constant 0 : index
    %20 = vector.load %arg9[%c0_14, %c0_15] : memref<4x512xf32, #tpu.memory_space<vmem>>, vector<4x512xf32>
    tpu.vector_store %arg9[%c0_14, %c0_15], %19 {strides = array<i32>} : memref<4x512xf32, #tpu.memory_space<vmem>>, vector<4x512xf32>,
    %c0_i32_16 = arith.constant 0 : i32
    %21 = arith.cmpi eq, %arg1, %c0_i32_16 : i32
    %22 = arith.extui %21 : i1 to i32
    %c0_i32_17 = arith.constant 0 : i32
    %23 = arith.cmpi ne, %22, %c0_i32_17 : i32
    scf.if %23 {
      %c0_18 = arith.constant 0 : index
      %c0_19 = arith.constant 0 : index
      %24 = vector.load %arg9[%c0_18, %c0_19] : memref<4x512xf32, #tpu.memory_space<vmem>>, vector<4x512xf32>
      %c0_20 = arith.constant 0 : index
      %c0_21 = arith.constant 0 : index
      %25 = vector.load %arg8[%c0_20, %c0_21] : memref<4x1xf32, #tpu.memory_space<vmem>>, vector<4x1xf32>
      %26 = vector.broadcast %25 : vector<4x1xf32> to vector<4x512xf32>
      %27 = arith.addf %24, %26 : vector<4x512xf32>
      %c0_22 = arith.constant 0 : index
      %c0_23 = arith.constant 0 : index
      %28 = vector.load %arg7[%c0_22, %c0_23] : memref<4x3xf32, #tpu.memory_space<vmem>>, vector<4x1xf32>
      %c0_24 = arith.constant 0 : index
      %c0_25 = arith.constant 0 : index
      %29 = vector.load %arg2[%c0_24, %c0_25] : memref<8x512xf32, #tpu.memory_space<vmem>>, vector<1x512xf32>
      %30 = vector.broadcast %28 : vector<4x1xf32> to vector<4x512xf32>
      %31 = vector.broadcast %29 : vector<1x512xf32> to vector<4x512xf32>
      %32 = arith.mulf %30, %31 : vector<4x512xf32>
      %33 = arith.addf %27, %32 : vector<4x512xf32>
      %c0_26 = arith.constant 0 : index
      %c1 = arith.constant 1 : index
      %34 = vector.load %arg7[%c0_26, %c1] : memref<4x3xf32, #tpu.memory_space<vmem>>, vector<4x1xf32>
      %c1_27 = arith.constant 1 : index
      %c0_28 = arith.constant 0 : index
      %35 = vector.load %arg2[%c1_27, %c0_28] : memref<8x512xf32, #tpu.memory_space<vmem>>, vector<1x512xf32>
      %36 = vector.broadcast %34 : vector<4x1xf32> to vector<4x512xf32>
      %37 = vector.broadcast %35 : vector<1x512xf32> to vector<4x512xf32>
      %38 = arith.mulf %36, %37 : vector<4x512xf32>
      %39 = arith.addf %33, %38 : vector<4x512xf32>
      %c0_29 = arith.constant 0 : index
      %c2 = arith.constant 2 : index
      %40 = vector.load %arg7[%c0_29, %c2] : memref<4x3xf32, #tpu.memory_space<vmem>>, vector<4x1xf32>
      %c2_30 = arith.constant 2 : index
      %c0_31 = arith.constant 0 : index
      %41 = vector.load %arg2[%c2_30, %c0_31] : memref<8x512xf32, #tpu.memory_space<vmem>>, vector<1x512xf32>
      %42 = vector.broadcast %40 : vector<4x1xf32> to vector<4x512xf32>
      %43 = vector.broadcast %41 : vector<1x512xf32> to vector<4x512xf32>
      %44 = arith.mulf %42, %43 : vector<4x512xf32>
      %45 = arith.addf %39, %44 : vector<4x512xf32>
      %c0_32 = arith.constant 0 : index
      %c0_33 = arith.constant 0 : index
      %46 = vector.load %arg9[%c0_32, %c0_33] : memref<4x512xf32, #tpu.memory_space<vmem>>, vector<4x512xf32>
      tpu.vector_store %arg9[%c0_32, %c0_33], %45 {strides = array<i32>} : memref<4x512xf32, #tpu.memory_space<vmem>>, vector<4x512xf32>,
    } else {
    }
    return
  }
  func.func @transform_0(%arg0: i32, %arg1: i32) -> (i32, i32) {
    %c0_i32 = arith.constant 0 : i32
    %c0_i32_0 = arith.constant 0 : i32
    return %c0_i32, %arg0 : i32, i32
  }
  func.func @transform_1(%arg0: i32, %arg1: i32) -> (i32, i32) {
    %c0_i32 = arith.constant 0 : i32
    %c0_i32_0 = arith.constant 0 : i32
    return %c0_i32, %arg0 : i32, i32
  }
  func.func @transform_2(%arg0: i32, %arg1: i32) -> (i32, i32) {
    %c0_i32 = arith.constant 0 : i32
    %c0_i32_0 = arith.constant 0 : i32
    return %arg1, %c0_i32 : i32, i32
  }
  func.func @transform_3(%arg0: i32, %arg1: i32) -> (i32, i32) {
    %c0_i32 = arith.constant 0 : i32
    %c0_i32_0 = arith.constant 0 : i32
    return %arg1, %c0_i32 : i32, i32
  }
  func.func @transform_4(%arg0: i32, %arg1: i32) -> (i32, i32) {
    %c0_i32 = arith.constant 0 : i32
    %c0_i32_0 = arith.constant 0 : i32
    return %c0_i32, %arg1 : i32, i32
  }
  func.func @transform_5(%arg0: i32, %arg1: i32) -> (i32, i32) {
    %c0_i32 = arith.constant 0 : i32
    %c0_i32_0 = arith.constant 0 : i32
    %c0_i32_1 = arith.constant 0 : i32
    return %c0_i32, %c0_i32_0 : i32, i32
  }
  func.func @transform_6(%arg0: i32, %arg1: i32) -> (i32, i32) {
    %c0_i32 = arith.constant 0 : i32
    %c0_i32_0 = arith.constant 0 : i32
    %c0_i32_1 = arith.constant 0 : i32
    return %c0_i32, %c0_i32_0 : i32, i32
  }
  func.func @transform_7(%arg0: i32, %arg1: i32) -> (i32, i32) {
    %c0_i32 = arith.constant 0 : i32
    %c0_i32_0 = arith.constant 0 : i32
    return %c0_i32, %arg0 : i32, i32
  }
}

</mosaic_0001>

<bundles_post_ra>
// kernel: tpu_custom_call.1
= control target key start
LH: loop header
LB: loop body
LE: loop exit
PB: predicated region body
PF: predicated region fallthrough
CT: control target
= control target key end

     0   :  { %vm45_vm0 = vcmask 64512   ;;  %v1034_v5 = vmov 0.0   ;;  %v1035_v9 = vmov 0   ;;  %s1573_s0 = inlined_call_operand.vmem [shape: f32[8,512], index: 0, kind: input, shape index: {}]   ;;  %s1574_s1 = inlined_call_operand.vmem [shape: f32[1,512], index: 1, kind: input, shape index: {}]   ;;  %s1575_s2 = inlined_call_operand.vmem [shape: f32[64,8], index: 2, kind: input, shape index: {}]   ;;  %s1576_s3 = inlined_call_operand.vmem [shape: f32[64,1], index: 3, kind: input, shape index: {}]   ;;  %s1577_s4 = inlined_call_operand.vmem [shape: f32[4,64], index: 4, kind: input, shape index: {}]   ;;  %s1578_s5 = inlined_call_operand.vmem [shape: f32[4,3], index: 5, kind: input, shape index: {}]   ;;  %s1579_s6 = inlined_call_operand.vmem [shape: f32[4,1], index: 6, kind: input, shape index: {}]   ;;  %s1580_s7 = inlined_call_operand.hbm [shape: f32[4,512], index: 7, kind: output, shape index: {}]  }
   0x1   :  { %v42_v0 = vld [vmem:[%s1573_s0 + $0x8] sm:$0xff]  ;;  %v44_v1 = vld [vmem:[%s1573_s0 + $0x18] sm:$0xff]  ;;  %v41_v2 = vld [vmem:[%s1573_s0] sm:$0xff]  ;;  %134 = vmatprep.mubr.f32.mxu0 %v1034_v5  ;;  %247 = vmatprep.mubr.f32.mxu1 %v1034_v5 }
   0x2   :  { %70 = vmatprep.subr.mxu0 %v42_v0  ;;  %183 = vmatprep.subr.mxu1 %v44_v1  ;;  %v43_v3 = vld [vmem:[%s1573_s0 + $0x10] sm:$0xff]  ;;  %v33_v4 = vld [vmem:[%s1575_s2] sm:$0xff]  ;;  %v34_v8 = vld [vmem:[%s1575_s2 + $0x8] sm:$0xff] }
   0x3   :  { %71 = vmatpush1.msra.mxu0 %v41_v2  ;;  %184 = vmatpush1.msra.mxu1 %v43_v3  ;;  %v296_v6 = vld [vmem:[%s1576_s3] sm:$0xff]  ;;  %v298_v7 = vld [vmem:[%s1576_s3 + $0x10] sm:$0xff] }
   0x4   :  { %883 = vmatmul.mubr.msk.f32.vlgmr.msra.gmra.mrb[0].mxu0 %vm45_vm0, %v33_v4  ;;  %891 = vmatmul.mubr.msk.f32.vlgmr.msra.gmra.mrb[0].mxu1 %vm45_vm0, %v33_v4 }
   0x5   :  { %140 = vmatprep.mubr.f32.mxu0 %v1034_v5  ;;  %253 = vmatprep.mubr.f32.mxu1 %v1034_v5 }
   0x6   :  { %941 = vset.pattern.permute.xlu0 %v1035_v9  ;;  %942 = vset.pattern.permute.xlu1 %v1035_v9 }
   0x7   :  { %307 = vperm.xlu0 %941, %v296_v6   ;;  %317 = vperm.xlu1 %942, %v298_v7  }
   0x8   :  { %12 = vsyncpa [#allocation3], 0  ;;  %884 = vmatmul.mubr.msk.f32.gmra.mrb[2].mxu0 %vm45_vm0, %v34_v8  ;;  %892 = vmatmul.mubr.msk.f32.gmra.mrb[2].mxu1 %vm45_vm0, %v34_v8  ;;  %v297_v10 = vld [vmem:[%s1576_s3 + $0x8] sm:$0xff]  ;;  %v299_v11 = vld [vmem:[%s1576_s3 + $0x18] sm:$0xff]  ;;  %v1036_v26 = vmov 1   ;;  %v1037_v27 = vmov 2   ;;  %v346_v28 = vlaneseq }
   0x9   :  { %146 = vmatprep.mubr.f32.mxu0 %v1034_v5  ;;  %259 = vmatprep.mubr.f32.mxu1 %v1034_v5  ;;  %v35_v12 = vld [vmem:[%s1575_s2 + $0x10] sm:$0xff]  ;;  %v300_v13 = vld [vmem:[%s1576_s3 + $0x20] sm:$0xff]  ;;  %v301_v14 = vld [vmem:[%s1576_s3 + $0x28] sm:$0xff]  ;;  %vm561_vm1 = vcmask 523264  }
   0xa   :  { %v36_v15 = vld [vmem:[%s1575_s2 + $0x18] sm:$0xff]  ;;  %v302_v16 = vld [vmem:[%s1576_s3 + $0x30] sm:$0xff]  ;;  %v37_v18 = vld [vmem:[%s1575_s2 + $0x20] sm:$0xff]  ;;  %v1186_v29 = vshrl.u32 %v346_v28, 7 }
   0xb   :  { %312 = vperm.xlu0 %941, %v297_v10   ;;  %322 = vperm.xlu1 %942, %v299_v11   ;;  %v303_v17 = vld [vmem:[%s1576_s3 + $0x38] sm:$0xff]  ;;  %v724_v19 = vld [vmem:[%s1579_s6] sm:$0xf]  ;;  %v38_v21 = vld [vmem:[%s1575_s2 + $0x28] sm:$0xff] }
   0xc   :  { %885 = vmatmul.mubr.msk.f32.gmra.mrb[4].mxu0 %vm45_vm0, %v35_v12  ;;  %893 = vmatmul.mubr.msk.f32.gmra.mrb[4].mxu1 %vm45_vm0, %v35_v12  ;;  %v739_v20 = vld [vmem:[%s1578_s5] sm:$0xf]  ;;  %v39_v22 = vld [vmem:[%s1575_s2 + $0x30] sm:$0xff]  ;;  %v40_v23 = vld [vmem:[%s1575_s2 + $0x38] sm:$0xff]  ;;  %v1189_v30 = vsub.s32 0, %v1186_v29  ;;  %v1192_v31 = vsub.s32 2, %v1186_v29 }
   0xd   :  { %152 = vmatprep.mubr.f32.mxu0 %v1034_v5  ;;  %265 = vmatprep.mubr.f32.mxu1 %v1034_v5  ;;  %v781_v24 = vld [vmem:[%s1578_s5] sm:$0xf]  ;;  %v1198_v33 = vsub.s32 1, %v1186_v29  ;;  %v1201_v34 = vsub.s32 3, %v1186_v29 }
   0xe   :  { %v824_v25 = vld [vmem:[%s1578_s5] sm:$0xf] }
   0xf   :  { %327 = vperm.xlu0 %941, %v300_v13   ;;  %332 = vperm.xlu1 %942, %v301_v14   ;;  %v304_v32 = vld [vmem:[%s1574_s1] sm:$0xf] }
  0x10   :  { %886 = vmatmul.mubr.msk.f32.gmra.mrb[6].mxu0 %vm45_vm0, %v36_v15  ;;  %894 = vmatmul.mubr.msk.f32.gmra.mrb[6].mxu1 %vm45_vm0, %v36_v15  ;;  %v1204_v37 = vrot.slane %v304_v32, %v1189_v30  ;;  %v1207_v38 = vrot.slane %v304_v32, %v1192_v31  ;;  %v1210_v39 = vrot.slane %v304_v32, %v1198_v33 }
  0x11   :  { %158 = vmatprep.mubr.f32.mxu0 %v1034_v5  ;;  %271 = vmatprep.mubr.f32.mxu1 %v1034_v5  ;;  %v1213_v40 = vrot.slane %v304_v32, %v1201_v34 }
  0x13   :  { %337 = vperm.xlu0 %941, %v302_v16   ;;  %342 = vperm.xlu1 %942, %v303_v17  }
  0x14   :  { %887 = vmatmul.mubr.msk.f32.gmra.mrb[8].mxu0 %vm45_vm0, %v37_v18  ;;  %895 = vmatmul.mubr.msk.f32.gmra.mrb[8].mxu1 %vm45_vm0, %v37_v18 }
  0x15   :  { %164 = vmatprep.mubr.f32.mxu0 %v1034_v5  ;;  %277 = vmatprep.mubr.f32.mxu1 %v1034_v5 }
  0x17   :  { %727 = vperm.xlu0 %941, %v724_v19   ;;  %743 = vperm.xlu1 %942, %v739_v20  }
  0x18   :  { %888 = vmatmul.mubr.msk.f32.gmra.mrb[10].mxu0 %vm45_vm0, %v38_v21  ;;  %896 = vmatmul.mubr.msk.f32.gmra.mrb[10].mxu1 %vm45_vm0, %v38_v21 }
  0x19   :  { %170 = vmatprep.mubr.f32.mxu0 %v1034_v5  ;;  %283 = vmatprep.mubr.f32.mxu1 %v1034_v5 }
  0x1b   :  { %943 = vset.pattern.permute.xlu0 %v1036_v26  ;;  %944 = vset.pattern.permute.xlu1 %v1037_v27 }
  0x1c   :  { %889 = vmatmul.mubr.msk.f32.gmra.mrb[12].mxu0 %vm45_vm0, %v39_v22  ;;  %897 = vmatmul.mubr.msk.f32.gmra.mrb[12].mxu1 %vm45_vm0, %v39_v22 }
  0x1d   :  { %176 = vmatprep.mubr.f32.mxu0 %v1034_v5  ;;  %289 = vmatprep.mubr.f32.mxu1 %v1034_v5 }
  0x1e   :  { %786 = vperm.xlu0 %943, %v781_v24   ;;  %829 = vperm.xlu1 %944, %v824_v25  }
  0x20   :  { %890 = vmatmul.mubr.msk.f32.gmra.mrb[14].mxu0 %vm45_vm0, %v40_v23  ;;  %898 = vmatmul.mubr.msk.f32.gmra.mrb[14].mxu1 %vm45_vm0, %v40_v23 }
  0x21   :  { %629 = vmatprep.mubr.f32.mxu0 %v1034_v5  ;;  %700 = vmatprep.mubr.f32.mxu1 %v1034_v5 }
  0x22   :  { %945 = vset.pattern.permute.xlu0 %v1037_v27 }
  0x86   :  { %v308_v35 = vpop.permute.xlu0 %307  ;;  %v318_v36 = vpop.permute.xlu1 %317 }
  0x87   :  { %v366_v42 = vadd.f32 %v1204_v37, %v308_v35  ;;  %v368_v43 = vadd.f32 %v1207_v38, %v308_v35  ;;  %v367_v44 = vadd.f32 %v1210_v39, %v308_v35  ;;  %v369_v45 = vadd.f32 %v1213_v40, %v308_v35 }
  0x88   :  { %v374_v47 = vadd.f32 %v1204_v37, %v318_v36  ;;  %v376_v51 = vadd.f32 %v1207_v38, %v318_v36  ;;  %v375_v52 = vadd.f32 %v1210_v39, %v318_v36  ;;  %v377_v53 = vadd.f32 %v1213_v40, %v318_v36 }
  0x8a   :  { %v313_v41 = vpop.permute.xlu0 %312  ;;  %v323_v46 = vpop.permute.xlu1 %322 }
  0x8b   :  { %v370_v50 = vadd.f32 %v1204_v37, %v313_v41  ;;  %v372_v58 = vadd.f32 %v1207_v38, %v313_v41  ;;  %v371_v59 = vadd.f32 %v1210_v39, %v313_v41  ;;  %v373_v62 = vadd.f32 %v1213_v40, %v313_v41 }
  0x8c   :  { %v378_v63 = vadd.f32 %v1204_v37, %v323_v46  ;;  %v380_v3 = vadd.f32 %v1207_v38, %v323_v46  ;;  %v379_v4 = vadd.f32 %v1210_v39, %v323_v46  ;;  %v381_v9 = vadd.f32 %v1213_v40, %v323_v46 }
  0x8e   :  { %v328_v0 = vpop.permute.xlu0 %327  ;;  %v333_v19 = vpop.permute.xlu1 %332 }
  0x8f   :  { %v1244_v10 = vadd.f32 %v1204_v37, %v328_v0  ;;  %v1253_v15 = vadd.f32 %v1207_v38, %v328_v0  ;;  %v1262_v18 = vadd.f32 %v1210_v39, %v328_v0  ;;  %v1269_v22 = vadd.f32 %v1213_v40, %v328_v0 }
  0x90   :  { %v1276_v27 = vadd.f32 %v1204_v37, %v333_v19  ;;  %v1285_v41 = vadd.f32 %v1207_v38, %v333_v19 }
  0xd7   :  { %v136_v48 = vpop.f32.mrb[0].mxu0  ;;  %v249_v49 = vpop.f32.mrb[0].mxu1 }
  0xd8   :  { %v1224_v54 = vadd.f32 %v366_v42, %v136_v48  ;;  %v1226_v55 = vadd.f32 %v368_v43, %v249_v49  ;;  %v138_v56 = vpop.f32.mrb[1].mxu0  ;;  %v251_v57 = vpop.f32.mrb[1].mxu1  ;;  %v1301_v48 = vadd.f32 %v1213_v40, %v333_v19 }
  0xd9   :  { %v1230_v60 = vadd.f32 %v367_v44, %v138_v56  ;;  %v1232_v61 = vadd.f32 %v369_v45, %v251_v57  ;;  %v1294_v44 = vadd.f32 %v1210_v39, %v333_v19  ;;  %v338_v45 = vpop.permute.xlu0 %337 }
  0xda   :  { %v430_v1 = vmax.f32 %v1224_v54, 1.1754944e-38  ;;  %v432_v2 = vmax.f32 %v1226_v55, 1.1754944e-38  ;;  %v1333_v19 = vadd.f32 %v1213_v40, %v338_v45 }
  0xdb   :  { %v431_v5 = vmax.f32 %v1230_v60, 1.1754944e-38  ;;  %v1583_v6 = vmax.f32 %v1232_v61, 1.1754944e-38  ;;  %v142_v7 = vpop.f32.mrb[2].mxu0  ;;  %v255_v8 = vpop.f32.mrb[2].mxu1 }
  0xdc   :  { %946 = vlog2.f32 %v430_v1  ;;  %v1248_v11 = vadd.f32 %v370_v50, %v142_v7  ;;  %v1250_v12 = vadd.f32 %v372_v58, %v255_v8  ;;  %v144_v13 = vpop.f32.mrb[3].mxu0  ;;  %v257_v14 = vpop.f32.mrb[3].mxu1  ;;  %v1326_v8 = vadd.f32 %v1210_v39, %v338_v45 }
  0xdd   :  { %948 = vlog2.f32 %v432_v2  ;;  %v1257_v16 = vadd.f32 %v371_v59, %v144_v13  ;;  %v1259_v17 = vadd.f32 %v373_v62, %v257_v14  ;;  %v1317_v62 = vadd.f32 %v1207_v38, %v338_v45 }
  0xde   :  { %950 = vlog2.f32 %v431_v5  ;;  %v434_v20 = vmax.f32 %v1248_v11, 1.1754944e-38  ;;  %v436_v21 = vmax.f32 %v1250_v12, 1.1754944e-38 }
  0xdf   :  { %952 = vlog2.f32 %v1583_v6  ;;  %v435_v23 = vmax.f32 %v1257_v16, 1.1754944e-38  ;;  %v1590_v24 = vmax.f32 %v1259_v17, 1.1754944e-38  ;;  %v148_v25 = vpop.f32.mrb[4].mxu0  ;;  %v261_v26 = vpop.f32.mrb[4].mxu1 }
  0xe0   :  { %954 = vlog2.f32 %v434_v20  ;;  %v1280_v28 = vadd.f32 %v374_v47, %v148_v25  ;;  %v1282_v32 = vadd.f32 %v376_v51, %v261_v26  ;;  %v150_v35 = vpop.f32.mrb[5].mxu0  ;;  %v263_v36 = vpop.f32.mrb[5].mxu1 }
  0xe1   :  { %956 = vlog2.f32 %v436_v21  ;;  %v1289_v42 = vadd.f32 %v375_v52, %v150_v35  ;;  %v1291_v43 = vadd.f32 %v377_v53, %v263_v36  ;;  %v1308_v53 = vadd.f32 %v1204_v37, %v338_v45 }
  0xe2   :  { %958 = vlog2.f32 %v435_v23  ;;  %v1589_v46 = vmax.f32 %v1280_v28, 1.1754944e-38  ;;  %v1584_v47 = vmax.f32 %v1282_v32, 1.1754944e-38 }
  0xe3   :  { %960 = vlog2.f32 %v1590_v24  ;;  %v1582_v49 = vmax.f32 %v1289_v42, 1.1754944e-38  ;;  %v1581_v50 = vmax.f32 %v1291_v43, 1.1754944e-38  ;;  %v154_v51 = vpop.f32.mrb[6].mxu0  ;;  %v267_v52 = vpop.f32.mrb[6].mxu1 }
  0xe4   :  { %962 = vlog2.f32 %v1589_v46  ;;  %v1312_v56 = vadd.f32 %v378_v63, %v154_v51  ;;  %v1314_v57 = vadd.f32 %v380_v3, %v267_v52  ;;  %v156_v58 = vpop.f32.mrb[7].mxu0  ;;  %v269_v59 = vpop.f32.mrb[7].mxu1 }
  0xe5   :  { %964 = vlog2.f32 %v1584_v47  ;;  %v1321_v0 = vadd.f32 %v379_v4, %v156_v58  ;;  %v1323_v7 = vadd.f32 %v381_v9, %v269_v59  ;;  %v343_v63 = vpop.permute.xlu1 %342 }
  0xe6   :  { %v947_v13 = vpop.eup %946  ;;  %966 = vlog2.f32 %v1582_v49  ;;  %v1585_v3 = vmax.f32 %v1312_v56, 1.1754944e-38  ;;  %v1586_v14 = vmax.f32 %v1314_v57, 1.1754944e-38  ;;  %v1340_v36 = vadd.f32 %v1204_v37, %v343_v63 }
  0xe7   :  { %v949_v25 = vpop.eup %948  ;;  %968 = vlog2.f32 %v1581_v50  ;;  %v1587_v4 = vmax.f32 %v1321_v0, 1.1754944e-38  ;;  %v1588_v9 = vmax.f32 %v1323_v7, 1.1754944e-38  ;;  %v160_v26 = vpop.f32.mrb[8].mxu0  ;;  %v463_v52 = vmul.f32 0.6931472, %v947_v13 }
  0xe8   :  { %v273_v35 = vpop.f32.mrb[8].mxu1  ;;  %v951_v51 = vpop.eup %950  ;;  %970 = vlog2.f32 %v1585_v3  ;;  %v1345_v45 = vadd.f32 %v1244_v10, %v160_v26  ;;  %v1356_v13 = vadd.f32 %v1207_v38, %v343_v63  ;;  %v1359_v6 = vadd.f32 %v1210_v39, %v343_v63 }
  0xe9   :  { %v1348_v58 = vadd.f32 %v1253_v15, %v273_v35  ;;  %v162_v59 = vpop.f32.mrb[9].mxu0  ;;  %v275_v50 = vpop.f32.mrb[9].mxu1  ;;  %972 = vlog2.f32 %v1586_v14  ;;  %v467_v26 = vmul.f32 0.6931472, %v949_v25  ;;  %v465_v47 = vmul.f32 0.6931472, %v951_v51 }
  0xea   :  { %v953_v49 = vpop.eup %952  ;;  %v1353_v37 = vadd.f32 %v1262_v18, %v162_v59  ;;  %974 = vlog2.f32 %v1587_v4  ;;  %v1593_v15 = vmax.f32 %v1345_v45, 1.1754944e-38  ;;  %v1368_v39 = vadd.f32 %v1213_v40, %v343_v63 }
  0xeb   :  { %v955_v10 = vpop.eup %954  ;;  %976 = vlog2.f32 %v1588_v9  ;;  %v1591_v18 = vmax.f32 %v1348_v58, 1.1754944e-38  ;;  %v166_v38 = vpop.f32.mrb[10].mxu0  ;;  %v1372_v25 = vmul.f32 %v463_v52, %v430_v1  ;;  %v1384_v54 = vadd.f32 %v1269_v22, %v275_v50 }
  0xec   :  { %v957_v35 = vpop.eup %956  ;;  %v471_v3 = vmul.f32 0.6931472, %v955_v10  ;;  %v279_v59 = vpop.f32.mrb[10].mxu1  ;;  %978 = vlog2.f32 %v1593_v15  ;;  %v1592_v10 = vmax.f32 %v1353_v37, 1.1754944e-38  ;;  %v1388_v63 = vmul.f32 %v467_v26, %v432_v2 }
  0xed   :  { %v959_v14 = vpop.eup %958  ;;  %v475_v51 = vmul.f32 0.6931472, %v957_v35  ;;  %v168_v4 = vpop.f32.mrb[11].mxu0  ;;  %980 = vlog2.f32 %v1591_v18  ;;  %v1395_v11 = vadd.f32 %v1276_v27, %v166_v38  ;;  %v469_v22 = vmul.f32 0.6931472, %v953_v49 }
  0xee   :  { %v281_v9 = vpop.f32.mrb[11].mxu1  ;;  %v961_v46 = vpop.eup %960  ;;  %v1379_v24 = vmul.f32 %v471_v3, %v434_v20  ;;  %v473_v40 = vmul.f32 0.6931472, %v959_v14  ;;  %v1399_v3 = vmul.f32 %v465_v47, %v431_v5  ;;  %982 = vlog2.f32 %v1592_v10 }
  0xef   :  { %v963_v1 = vpop.eup %962  ;;  %v1392_v52 = vmul.f32 %v475_v51, %v436_v21  ;;  %v477_v35 = vmul.f32 0.6931472, %v961_v46  ;;  %v172_v2 = vpop.f32.mrb[12].mxu0  ;;  %v1594_v60 = vmax.f32 %v1395_v11, 1.1754944e-38  ;;  %v1596_v26 = vmax.f32 %v1259_v17, 1.1754944e-38 }
  0xf0   :  { %v965_v20 = vpop.eup %964  ;;  %v285_v14 = vpop.f32.mrb[12].mxu1  ;;  %v479_v46 = vmul.f32 0.6931472, %v963_v1  ;;  %v531_v49 = vmul.f32 %v473_v40, %v435_v23  ;;  %v1414_v18 = vadd.f32 %v1285_v41, %v279_v59  ;;  %v1419_v10 = vadd.f32 %v1294_v44, %v168_v4 }
  0xf1   :  { %v967_v12 = vpop.eup %966  ;;  %v174_v5 = vpop.f32.mrb[13].mxu0  ;;  %v533_v38 = vmul.f32 %v477_v35, %v1596_v26  ;;  %v483_v51 = vmul.f32 0.6931472, %v965_v20  ;;  %984 = vlog2.f32 %v1594_v60  ;;  %v1597_v16 = vmax.f32 %v1384_v54, 1.1754944e-38 }
  0xf2   :  { %v287_v27 = vpop.f32.mrb[13].mxu1  ;;  %v969_v47 = vpop.eup %968  ;;  %v481_v1 = vmul.f32 0.6931472, %v967_v12  ;;  %v452_v17 = vmax.f32 %v1414_v18, 1.1754944e-38  ;;  %v1425_v23 = vadd.f32 %v1301_v48, %v281_v9  ;;  %v1598_v35 = vmax.f32 %v1280_v28, 1.1754944e-38 }
  0xf3   :  { %v971_v21 = vpop.eup %970  ;;  %v485_v50 = vmul.f32 0.6931472, %v969_v47  ;;  %986 = vlog2.f32 %v1597_v16  ;;  %v178_v41 = vpop.f32.mrb[14].mxu0  ;;  %v451_v44 = vmax.f32 %v1419_v10, 1.1754944e-38  ;;  %v1433_v4 = vadd.f32 %v1308_v53, %v172_v2 }
  0xf4   :  { %v973_v15 = vpop.eup %972  ;;  %v487_v55 = vmul.f32 0.6931472, %v971_v21  ;;  %v291_v59 = vpop.f32.mrb[14].mxu1  ;;  %v1429_v20 = vmul.f32 %v479_v46, %v1598_v35  ;;  %v1599_v16 = vmax.f32 %v1312_v56, 1.1754944e-38  ;;  %988 = vlog2.f32 %v452_v17 }
  0xf5   :  { %v975_v40 = vpop.eup %974  ;;  %v491_v12 = vmul.f32 0.6931472, %v973_v15  ;;  %v180_v21 = vpop.f32.mrb[15].mxu0  ;;  %v1595_v28 = vmax.f32 %v1425_v23, 1.1754944e-38  ;;  %v1600_v15 = vmax.f32 %v1282_v32, 1.1754944e-38  ;;  %v1601_v53 = vmax.f32 %v1314_v57, 1.1754944e-38 }
  0xf6   :  { %v293_v47 = vpop.f32.mrb[15].mxu1  ;;  %v977_v26 = vpop.eup %976  ;;  %v1437_v48 = vmul.f32 %v487_v55, %v1599_v16  ;;  %v489_v9 = vmul.f32 0.6931472, %v975_v40  ;;  %990 = vlog2.f32 %v451_v44  ;;  %v1602_v55 = vmax.f32 %v1232_v61, 1.1754944e-38 }
  0xf7   :  { %v979_v46 = vpop.eup %978  ;;  %v1444_v35 = vmul.f32 %v483_v51, %v1600_v15  ;;  %v1448_v2 = vmul.f32 %v491_v12, %v1601_v53  ;;  %v493_v60 = vmul.f32 0.6931472, %v977_v26  ;;  %992 = vlog2.f32 %v1595_v28 }
  0xf8   :  { %v981_v56 = vpop.eup %980  ;;  %v529_v40 = vmul.f32 %v469_v22, %v1602_v55  ;;  %v909_v16 = vpack.c.bf16 %v1437_v48, %v1429_v20  ;;  %v454_v32 = vmax.f32 %v1433_v4, 1.1754944e-38  ;;  %v1603_v57 = vmax.f32 %v1289_v42, 1.1754944e-38 }
  0xf9   :  { %v1604_v12 = vmax.f32 %v1291_v43, 1.1754944e-38  ;;  %v925_v15 = vpack.c.bf16 %v1448_v2, %v1444_v35  ;;  %v495_v53 = vmul.f32 0.6931472, %v979_v46  ;;  %v1605_v61 = vmax.f32 %v1321_v0, 1.1754944e-38  ;;  %v983_v42 = vpop.eup %982 }
  0xfa   :  { %v535_v51 = vmul.f32 %v481_v1, %v1603_v57  ;;  %v1606_v20 = vmax.f32 %v1323_v7, 1.1754944e-38  ;;  %v1470_v55 = vadd.f32 %v1317_v62, %v285_v14  ;;  %v1473_v28 = vadd.f32 %v1326_v8, %v174_v5 }
  0xfb   :  { %v537_v26 = vmul.f32 %v485_v50, %v1604_v12  ;;  %v539_v22 = vmul.f32 %v489_v9, %v1605_v61  ;;  %v499_v1 = vmul.f32 0.6931472, %v981_v56  ;;  %v1476_v43 = vadd.f32 %v1333_v19, %v287_v27  ;;  %v985_v8 = vpop.eup %984 }
  0xfc   :  { %v541_v48 = vmul.f32 %v493_v60, %v1606_v20  ;;  %v903_v50 = vpack.c.bf16 %v531_v49, %v1399_v3  ;;  %v919_v46 = vpack.c.bf16 %v533_v38, %v529_v40  ;;  %994 = vlog2.f32 %v454_v32 }
  0xfd   :  { %v456_v0 = vmax.f32 %v1470_v55, 1.1754944e-38  ;;  %v455_v7 = vmax.f32 %v1473_v28, 1.1754944e-38  ;;  %v1484_v62 = vadd.f32 %v1340_v36, %v178_v41  ;;  %v1607_v14 = vmax.f32 %v1345_v45, 1.1754944e-38  ;;  %v987_v27 = vpop.eup %986 }
  0xfe   :  { %v457_v19 = vmax.f32 %v1476_v43, 1.1754944e-38  ;;  %904 = vmatprep.subr.bf16.mxu0 %v903_v50  ;;  %920 = vmatprep.subr.bf16.mxu1 %v919_v46  ;;  %v1490_v3 = vadd.f32 %v1356_v13, %v291_v59  ;;  %v1493_v5 = vadd.f32 %v1359_v6, %v180_v21  ;;  %v503_v49 = vmul.f32 0.6931472, %v985_v8  ;;  %v989_v21 = vpop.eup %988  ;;  %v740_v43 = vld [vmem:[%s1573_s0] ss:$8 sm:$0xf] }
  0xff   :  { %v542_v60 = vmul.f32 %v495_v53, %v1607_v14  ;;  %996 = vlog2.f32 %v456_v0  ;;  %v458_v36 = vmax.f32 %v1484_v62, 1.1754944e-38  ;;  %v1608_v45 = vpack.c.bf16 %v1379_v24, %v1372_v25 }
 0x100   :  { %v1609_v38 = vpack.c.bf16 %v1392_v52, %v1388_v63  ;;  %v1505_v13 = vadd.f32 %v1368_v39, %v293_v47  ;;  %v497_v6 = vmul.f32 0.6931472, %v983_v42  ;;  %998 = vlog2.f32 %v455_v7  ;;  %v991_v39 = vpop.eup %990 }
 0x101   :  { %906 = vmatpush1.bf16.msra.mxu0 %v1608_v45  ;;  %v460_v41 = vmax.f32 %v1490_v3, 1.1754944e-38  ;;  %v459_v59 = vmax.f32 %v1493_v5, 1.1754944e-38  ;;  %v1610_v9 = vmax.f32 %v1395_v11, 1.1754944e-38  ;;  %1000 = vlog2.f32 %v457_v19  ;;  %v993_v2 = vpop.eup %992 }
 0x102   :  { %922 = vmatpush1.bf16.msra.mxu1 %v1609_v38  ;;  %v461_v25 = vmax.f32 %v1505_v13, 1.1754944e-38  ;;  %v907_v63 = vpack.c.bf16 %v539_v22, %v535_v51  ;;  %v501_v52 = vmul.f32 0.6931472, %v987_v27  ;;  %v507_v47 = vmul.f32 0.6931472, %v989_v21 }
 0x103   :  { %v546_v24 = vmul.f32 %v503_v49, %v1610_v9  ;;  %1002 = vlog2.f32 %v458_v36  ;;  %v923_v35 = vpack.c.bf16 %v541_v48, %v537_v26  ;;  %v505_v40 = vmul.f32 0.6931472, %v991_v39 }
 0x104   :  { %1004 = vlog2.f32 %v460_v41  ;;  %908 = vmatprep.subr.bf16.mxu0 %v907_v63  ;;  %v1611_v57 = vmax.f32 %v1348_v58, 1.1754944e-38  ;;  %v548_v12 = vmul.f32 %v507_v47, %v452_v17  ;;  %v509_v53 = vmul.f32 0.6931472, %v993_v2 }
 0x105   :  { %v913_v56 = vpack.c.bf16 %v546_v24, %v542_v60  ;;  %1006 = vlog2.f32 %v459_v59  ;;  %924 = vmatprep.subr.bf16.mxu1 %v923_v35  ;;  %910 = vmatpush1.bf16.msra.mxu0 %v909_v16  ;;  %v1612_v51 = vmax.f32 %v1353_v37, 1.1754944e-38  ;;  %v547_v26 = vmul.f32 %v505_v40, %v451_v44 }
 0x106   :  { %v544_v11 = vmul.f32 %v499_v1, %v1611_v57  ;;  %1008 = vlog2.f32 %v461_v25  ;;  %926 = vmatpush1.bf16.msra.mxu1 %v925_v15  ;;  %v1613_v22 = vmax.f32 %v1384_v54, 1.1754944e-38  ;;  %v1614_v48 = vmax.f32 %v1425_v23, 1.1754944e-38  ;;  %v995_v17 = vpop.eup %994 }
 0x107   :  { %v543_v61 = vmul.f32 %v497_v6, %v1612_v51  ;;  %v511_v10 = vmul.f32 0.6931472, %v995_v17  ;;  %v1038_v28 = vmov 839922192   ;;  %v762_v2 = vrot.slane %v740_v43, %v1201_v34 }
 0x108   :  { %v545_v20 = vmul.f32 %v501_v52, %v1613_v22  ;;  %v929_v58 = vpack.c.bf16 %v548_v12, %v544_v11  ;;  %v549_v18 = vmul.f32 %v509_v53, %v1614_v48  ;;  %v730_v55 = vunpack.c.l.s4 %v1038_v28 }
 0x109   :  { %v911_v42 = vpack.c.bf16 %v547_v26, %v543_v61  ;;  %v997_v50 = vpop.eup %996  ;;  %v550_v3 = vmul.f32 %v511_v10, %v454_v32  ;;  %v560_v32 = vld [vmem:[%s1577_s4] sm:$0xf]  ;;  %v758_v52 = vrot.slane %v740_v43, %v1192_v31 }
 0x10a   :  { %v927_v1 = vpack.c.bf16 %v549_v18, %v545_v20  ;;  %v999_v16 = vpop.eup %998  ;;  %v515_v15 = vmul.f32 0.6931472, %v997_v50 }
 0x10b   :  { %912 = vmatprep.subr.bf16.mxu0 %v911_v42  ;;  %v1001_v37 = vpop.eup %1000  ;;  %v513_v54 = vmul.f32 0.6931472, %v999_v16 }
 0x10c   :  { %928 = vmatprep.subr.bf16.mxu1 %v927_v1  ;;  %914 = vmatpush1.bf16.msra.mxu0 %v913_v56  ;;  %v517_v14 = vmul.f32 0.6931472, %v1001_v37  ;;  %v552_v49 = vmul.f32 %v515_v15, %v456_v0  ;;  %v728_v0 = vpop.permute.xlu0 %727 }
 0x10d   :  { %930 = vmatpush1.bf16.msra.mxu1 %v929_v58  ;;  %v1003_v44 = vpop.eup %1002  ;;  %v551_v13 = vmul.f32 %v513_v54, %v455_v7  ;;  %v901_v7 = vld [vmem:[%s1573_s0 + $0x1] ss:$8 sm:$0xf] }
 0x10e   :  { %v1005_v46 = vpop.eup %1004  ;;  %v519_v62 = vmul.f32 0.6931472, %v1003_v44  ;;  %v553_v9 = vmul.f32 %v517_v14, %v457_v19  ;;  %v731_v19 = vunpack.c.0.s8 %v730_v55  ;;  %v793_v47 = vrot.slane %v901_v7, %v1189_v30 }
 0x10f   :  { %v1007_v8 = vpop.eup %1006  ;;  %v523_v23 = vmul.f32 0.6931472, %v1005_v46  ;;  %v797_v35 = vrot.slane %v901_v7, %v1198_v33  ;;  %v801_v56 = vrot.slane %v901_v7, %v1192_v31  ;;  %v805_v40 = vrot.slane %v901_v7, %v1201_v34 }
 0x110   :  { %v1009_v60 = vpop.eup %1008  ;;  %v554_v5 = vmul.f32 %v519_v62, %v458_v36  ;;  %v521_v27 = vmul.f32 0.6931472, %v1007_v8  ;;  %v744_v36 = vpop.permute.xlu1 %743  ;;  %v734_v11 = vsub.s32 %v731_v19, %v1186_v29 }
 0x111   :  { %v556_v45 = vmul.f32 %v523_v23, %v460_v41  ;;  %v525_v38 = vmul.f32 0.6931472, %v1009_v60  ;;  %v750_v41 = vrot.slane %v740_v43, %v1189_v30  ;;  %v787_v57 = vpop.permute.xlu0 %786  ;;  %v769_v17 = vmul.f32 %v758_v52, %v744_v36 }
 0x112   :  { %v917_v6 = vpack.c.bf16 %v554_v5, %v550_v3  ;;  %v555_v21 = vmul.f32 %v521_v27, %v459_v59  ;;  %v754_v59 = vrot.slane %v740_v43, %v1198_v33  ;;  %v810_v50 = vmul.f32 %v793_v47, %v787_v57 }
 0x113   :  { %v933_v24 = vpack.c.bf16 %v556_v45, %v552_v49  ;;  %v557_v63 = vmul.f32 %v525_v38, %v461_v25  ;;  %v902_v25 = vld [vmem:[%s1573_s0 + $0x2] ss:$8 sm:$0xf]  ;;  %v767_v26 = vmul.f32 %v750_v41, %v744_v36  ;;  %v811_v16 = vmul.f32 %v797_v35, %v787_v57  ;;  %s1039_s0 = smov [#allocation2]  }
 0x114   :  { %v915_v39 = vpack.c.bf16 %v555_v21, %v551_v13  ;;  %v836_v53 = vrot.slane %v902_v25, %v1189_v30  ;;  %v840_v51 = vrot.slane %v902_v25, %v1198_v33  ;;  %v830_v61 = vpop.permute.xlu1 %829  ;;  %v768_v22 = vmul.f32 %v754_v59, %v744_v36  ;;  %s875_s30 = sshll.u32 %s1039_s0, 4  ;;  %s876_s30 = int_to_ptr.vmem [resolvable:$true] %s875_s30 }
 0x115   :  { %v931_v4 = vpack.c.bf16 %v557_v63, %v553_v9  ;;  %v844_v48 = vrot.slane %v902_v25, %v1192_v31  ;;  %v848_v18 = vrot.slane %v902_v25, %v1201_v34  ;;  %v770_v29 = vmul.f32 %v762_v2, %v744_v36  ;;  %s1010_s8 = scalar_lea.vmem %s876_s30, 256  ;;  %p1015_p1 = scmp.lt.s32.totalorder %s876_s30, %s876_s30 }
 0x116   :  { %916 = vmatprep.subr.bf16.mxu0 %v915_v39  ;;  %v812_v10 = vmul.f32 %v801_v56, %v787_v57  ;;  %v813_v30 = vmul.f32 %v805_v40, %v787_v57  ;;  %v735_v44 = vrot.slane %v728_v0, %v734_v11  ;;  %v853_v33 = vmul.f32 %v836_v53, %v830_v61  ;;  %p1011_p0 = scmp.ne.s32.totalorder %s876_s30, %s1010_s8  ;;  %p1016_p2 = scmp.lt.s32.totalorder %s1010_s8, %s1010_s8 }
 0x117   :  { %932 = vmatprep.subr.bf16.mxu1 %v931_v4  ;;  %918 = vmatpush1.bf16.msra.mxu0 %v917_v6  ;;  %v854_v15 = vmul.f32 %v840_v51, %v830_v61  ;;  %v855_v46 = vmul.f32 %v844_v48, %v830_v61  ;;  %v856_v54 = vmul.f32 %v848_v18, %v830_v61 }
 0x118   :  { %934 = vmatpush1.bf16.msra.mxu1 %v933_v24  ;;  %v775_v62 = vcombine.low %v767_v26, %v768_v22  ;;  %v818_v8 = vcombine.low %v810_v50, %v811_v16  ;;  %v776_v31 = vcombine.low %v769_v17, %v770_v29  ;;  %v819_v23 = vcombine.low %v812_v10, %v813_v30  ;;  %p1017_p3 = por %p1016_p2, %p1015_p1 }
 0x119   :  { %v861_v60 = vcombine.low %v853_v33, %v854_v15  ;;  %v862_v5 = vcombine.low %v855_v46, %v856_v54 }
 0x11a   :  { %899 = vmatmul.mubr.msk.f32.vlgmr.msra.gmra.mrb[16].mxu0 %vm561_vm1, %v560_v32  ;;  %p1018_p4 = pnand %p1017_p3, %p1011_p0 }
 0x11b   :  { %900 = vmatmul.mubr.msk.f32.vlgmr.msra.gmra.mrb[16].mxu1 %vm561_vm1, %v560_v32 }
 0x1ed   :  { %v631_v12 = vpop.f32.mrb[16].mxu0 }
 0x1ee   :  { %v702_v20 = vpop.f32.mrb[16].mxu1  ;;  %v633_v58 = vpop.f32.mrb[17].mxu0 }
 0x1ef   :  { %v711_v42 = vcombine.low %v631_v12, %v633_v58  ;;  %v704_v1 = vpop.f32.mrb[17].mxu1 }
 0x1f0   :  { %v712_v37 = vcombine.low %v702_v20, %v704_v1 }
 0x1f1   :  { %v737_v14 = vadd.f32 %v735_v44, %v711_v42 }
 0x1f2   :  { %v738_v34 = vadd.f32 %v735_v44, %v712_v37 }
 0x1f3   :  { %v779_v3 = vadd.f32 %v775_v62, %v737_v14 }
 0x1f4   :  { %v780_v27 = vadd.f32 %v776_v31, %v738_v34 }
 0x1f5   :  { %v822_v49 = vadd.f32 %v818_v8, %v779_v3 }
 0x1f6   :  { %v823_v45 = vadd.f32 %v819_v23, %v780_v27 }
 0x1f7   :  { %v865_v38 = vadd.f32 %v861_v60, %v822_v49 }
 0x1f8   :  { %v866_v13 = vadd.f32 %v862_v5, %v823_v45 }
 0x1f9   :  { %867 = vst [vmem:[#allocation2] sm:$0xff] %v865_v38 }
 0x1fa   :  { %868 = vst [vmem:[#allocation2 + $0x8] sm:$0xff] %v866_v13 }
 0x1fb   :  { %1021 = shalt.err (!%p1018_p4)
}
 0x1fc   :  { %s1022_s11 = scalar_lea.hbm %s1580_s7, 256 }
 0x1fd   :  { %p1023_p5 = scmp.ne.s32.totalorder %s1580_s7, %s1022_s11  ;;  %p1026_p6 = scmp.lt.u32.totalorder %s1022_s11, %s1580_s7 }
 0x1ff   :  { %p1028_p7 = pnand %p1026_p6, %p1023_p5 }
 0x201   :  { %1031 = shalt.err (!%p1028_p7)
}
 0x202   :  { %878 = dma.vmem_to_hbm [thread:$0]  %s876_s30, 256, %s1580_s7, [#allocation3]  }
 0x203   :  { %1032 = dma.done.wait [#allocation3], 256  }
 0x204   :  { %1033 = vsyncadd [#allocation3], 4294967040 }
 0x205   :  { %882 = vsyncpa [#allocation3], 1 }

</bundles_post_ra>
